<compile_context>
chip_gen: v7x
topology: tpu7x:2x2x1
jax: 0.10.0
libtpu: 0.0.40
codegen_flags: <defaults>
</compile_context>

<pallas_src>
import functools

import jax
import jax.numpy as jnp
import numpy as np
from jax import lax
from jax.experimental import pallas as pl
from jax.experimental.pallas import tpu as pltpu


def _gelu_exact(x):
    # Matches PyTorch F.gelu default (erf-based, not tanh approximation).
    return 0.5 * x * (1.0 + lax.erf(x * jnp.float32(0.7071067811865476)))


def _fire_kernel(x_ref, wsq_ref, bsq_ref, w1_ref, b1_ref, w3_ref, b3_ref,
                 mask_ref, out_ref, *, W, HW):
    """One batch element; pixels-on-lanes layout: every operand is (C, H*W)."""
    x = x_ref[0]                                               # (Cin, HW)

    # ---- squeeze 1x1 conv + GELU  :  (Csq, Cin) @ (Cin, HW) -----------------
    s = jnp.dot(wsq_ref[...], x, preferred_element_type=jnp.float32)
    s = _gelu_exact(s + bsq_ref[...])                          # (Csq, HW)

    # ---- expand 1x1 conv + GELU   :  (E1, Csq) @ (Csq, HW) ------------------
    e1 = jnp.dot(w1_ref[...], s, preferred_element_type=jnp.float32)
    e1 = _gelu_exact(e1 + b1_ref[...])                         # (E1, HW)

    # ---- expand 3x3 conv (padding=1) + GELU : single im2col matmul ----------
    # Tap (dy, dx) needs s[:, p + dy*W + dx] at flat pixel p; a lane roll of
    # the unpadded activation provides exactly that, and the precomputed 0/1
    # border mask zeroes the wrap-around values (out-of-image taps).
    taps = []
    k = 0
    for dy in (-1, 0, 1):
        for dx in (-1, 0, 1):
            shift = dy * W + dx
            t = s if shift == 0 else pltpu.roll(s, (-shift) % HW, axis=1)
            taps.append(t * mask_ref[k:k + 1, :])              # (Csq, HW)
            k += 1
    im2col = jnp.concatenate(taps, axis=0)                     # (9*Csq, HW)
    e3 = jnp.dot(w3_ref[...], im2col, preferred_element_type=jnp.float32)
    e3 = _gelu_exact(e3 + b3_ref[...])                         # (E3, HW)

    # ---- fused, lane-dense output (already NCHW-flat -> no wrapper concat) --
    out_ref[0] = jnp.concatenate([e1, e3], axis=0)             # (E1+E3, HW)


def _border_masks(H, W):
    """(9, H*W) f32 validity masks for the 9 taps of a 3x3 conv, padding=1."""
    y = np.arange(H * W) // W
    x = np.arange(H * W) % W
    rows = []
    for dy in (-1, 0, 1):
        for dx in (-1, 0, 1):
            valid = ((y + dy >= 0) & (y + dy < H) &
                     (x + dx >= 0) & (x + dx < W))
            rows.append(valid.astype(np.float32))
    return jnp.asarray(np.stack(rows, axis=0))


def squeeze_block_pallas(x_nchw, params):
    """x_nchw: (N, Cin, H, W) f32; params in PyTorch Conv2d layouts (OIHW).

    Returns (N, E1+E3, H, W) f32, matching
    torch.cat([gelu(expand1x1(gelu(squeeze(x)))), gelu(expand3x3(...))], 1).
    """
    wsq, bsq, w1, b1, w3, b3 = params
    N, Cin, H, W = x_nchw.shape
    Csq = wsq.shape[0]
    E1 = w1.shape[0]
    E3 = w3.shape[0]
    HW = H * W

    # Free reshape only (stays NCHW-contiguous): no activation transposes.
    x_flat = x_nchw.reshape(N, Cin, HW)

    # Tiny one-off weight re-layouts for the (Cout, K) @ (K, HW) matmuls.
    wsq2 = wsq.reshape(Csq, Cin)
    w12 = w1.reshape(E1, Csq)
    # (E3, Csq, 3, 3) -> (E3, ky, kx, Csq) -> (E3, 9*Csq); matches tap order.
    w32 = jnp.transpose(w3, (0, 2, 3, 1)).reshape(E3, 9 * Csq)
    bsq2 = bsq.reshape(Csq, 1)
    b12 = b1.reshape(E1, 1)
    b32 = b3.reshape(E3, 1)
    masks = _border_masks(H, W)

    kernel = functools.partial(_fire_kernel, W=W, HW=HW)

    out_flat = pl.pallas_call(
        kernel,
        out_shape=jax.ShapeDtypeStruct((N, E1 + E3, HW), jnp.float32),
        grid=(N,),
        in_specs=[
            pl.BlockSpec((1, Cin, HW), lambda n: (n, 0, 0)),
            pl.BlockSpec((Csq, Cin), lambda n: (0, 0)),
            pl.BlockSpec((Csq, 1), lambda n: (0, 0)),
            pl.BlockSpec((E1, Csq), lambda n: (0, 0)),
            pl.BlockSpec((E1, 1), lambda n: (0, 0)),
            pl.BlockSpec((E3, 9 * Csq), lambda n: (0, 0)),
            pl.BlockSpec((E3, 1), lambda n: (0, 0)),
            pl.BlockSpec((9, HW), lambda n: (0, 0)),
        ],
        out_specs=pl.BlockSpec((1, E1 + E3, HW), lambda n: (n, 0, 0)),
        compiler_params=pltpu.CompilerParams(
            dimension_semantics=("parallel",)),   # batch is fully independent
    )(x_flat, wsq2, bsq2, w12, b12, w32, b32, masks)

    return out_flat.reshape(N, E1 + E3, H, W)


def _reference(x_nchw, params):
    """Pure-JAX reference with lax.conv in NCHW (mimics the PyTorch module)."""
    wsq, bsq, w1, b1, w3, b3 = params

    def conv(x, w_oihw, b, pad):
        dn = lax.conv_dimension_numbers(x.shape, w_oihw.shape,
                                        ("NCHW", "OIHW", "NCHW"))
        y = lax.conv_general_dilated(x, w_oihw, (1, 1),
                                     [(pad, pad), (pad, pad)],
                                     dimension_numbers=dn)
        return y + b.reshape(1, -1, 1, 1)

    s = _gelu_exact(conv(x_nchw, wsq, bsq, 0))
    e1 = _gelu_exact(conv(s, w1, b1, 0))
    e3 = _gelu_exact(conv(s, w3, b3, 1))
    return jnp.concatenate([e1, e3], axis=1)


def init_params(key, input_channels, squeeze_planes, expand1x1_planes,
                expand3x3_planes):
    """Parameters in the same layouts as the PyTorch module (OIHW weights)."""
    ks = jax.random.split(key, 6)
    scale = 0.1
    wsq = scale * jax.random.normal(ks[0], (squeeze_planes, input_channels, 1, 1), jnp.float32)
    bsq = scale * jax.random.normal(ks[1], (squeeze_planes,), jnp.float32)
    w1 = scale * jax.random.normal(ks[2], (expand1x1_planes, squeeze_planes, 1, 1), jnp.float32)
    b1 = scale * jax.random.normal(ks[3], (expand1x1_planes,), jnp.float32)
    w3 = scale * jax.random.normal(ks[4], (expand3x3_planes, squeeze_planes, 3, 3), jnp.float32)
    b3 = scale * jax.random.normal(ks[5], (expand3x3_planes,), jnp.float32)
    return (wsq, bsq, w1, b1, w3, b3)


if __name__ == "__main__":
    key = jax.random.PRNGKey(0)
    k_x, k_p = jax.random.split(key)

    N, Cin, H, W = 2, 4, 16, 16
    squeeze_planes, expand1x1_planes, expand3x3_planes = 8, 16, 16

    x = jax.random.normal(k_x, (N, Cin, H, W), jnp.float32)
    params = init_params(k_p, Cin, squeeze_planes, expand1x1_planes,
                         expand3x3_planes)

    out = jax.block_until_ready(squeeze_block_pallas(x, params))
    ref = jax.block_until_ready(_reference(x, params))

    assert out.shape == (N, expand1x1_planes + expand3x3_planes, H, W), out.shape
    max_err = float(jnp.max(jnp.abs(out - ref)))
    assert jnp.allclose(out, ref, atol=1e-4, rtol=1e-4), max_err

    print("KERNEL_OK")
</pallas_src>

<mosaic_0001>
module attributes {stable_mosaic.version = 11 : i64} {
  func.func @_fire_kernel(%arg0: i32, %arg1: memref<1x4x256xf32, #tpu.memory_space<vmem>>, %arg2: memref<8x4xf32, #tpu.memory_space<vmem>>, %arg3: memref<8x1xf32, #tpu.memory_space<vmem>>, %arg4: memref<16x8xf32, #tpu.memory_space<vmem>>, %arg5: memref<16x1xf32, #tpu.memory_space<vmem>>, %arg6: memref<16x72xf32, #tpu.memory_space<vmem>>, %arg7: memref<16x1xf32, #tpu.memory_space<vmem>>, %arg8: memref<9x256xf32, #tpu.memory_space<vmem>>, %arg9: memref<1x32x256xf32, #tpu.memory_space<vmem>>) attributes {dimension_semantics = [#tpu.dimension_semantics<parallel>], iteration_bounds = array<i64: 2>, scalar_prefetch = 0 : i64, scratch_operands = 0 : i64, tpu.core_type = #tpu.core_type<tc>, window_params = [{transform_indices = @transform_0, window_bounds = array<i64: 1, 4, 256>}, {pipeline_mode = #tpu.pipeline_mode<synchronous>, transform_indices = @transform_1, window_bounds = array<i64: 8, 4>}, {pipeline_mode = #tpu.pipeline_mode<synchronous>, transform_indices = @transform_2, window_bounds = array<i64: 8, 1>}, {pipeline_mode = #tpu.pipeline_mode<synchronous>, transform_indices = @transform_3, window_bounds = array<i64: 16, 8>}, {pipeline_mode = #tpu.pipeline_mode<synchronous>, transform_indices = @transform_4, window_bounds = array<i64: 16, 1>}, {pipeline_mode = #tpu.pipeline_mode<synchronous>, transform_indices = @transform_5, window_bounds = array<i64: 16, 72>}, {pipeline_mode = #tpu.pipeline_mode<synchronous>, transform_indices = @transform_6, window_bounds = array<i64: 16, 1>}, {pipeline_mode = #tpu.pipeline_mode<synchronous>, transform_indices = @transform_7, window_bounds = array<i64: 9, 256>}, {transform_indices = @transform_8, window_bounds = array<i64: 1, 32, 256>}]} {
    %c0 = arith.constant 0 : index
    %c0_0 = arith.constant 0 : index
    %c0_1 = arith.constant 0 : index
    %0 = vector.load %arg1[%c0, %c0_0, %c0_1] : memref<1x4x256xf32, #tpu.memory_space<vmem>>, vector<1x4x256xf32>
    %1 = vector.shape_cast %0 : vector<1x4x256xf32> to vector<4x256xf32>
    %c0_2 = arith.constant 0 : index
    %c0_3 = arith.constant 0 : index
    %2 = vector.load %arg2[%c0_2, %c0_3] : memref<8x4xf32, #tpu.memory_space<vmem>>, vector<8x4xf32>
    %cst = arith.constant dense<0.000000e+00> : vector<8x256xf32>
    %3 = tpu.matmul %2, %1, %cst {dimension_numbers = #tpu.dot_dimension_numbers<[1], [0], [0], [1], [0, 0, 1, 1], [], []>} : vector<8x4xf32>, vector<4x256xf32>, vector<8x256xf32> -> vector<8x256xf32>
    %c0_4 = arith.constant 0 : index
    %c0_5 = arith.constant 0 : index
    %4 = vector.load %arg3[%c0_4, %c0_5] : memref<8x1xf32, #tpu.memory_space<vmem>>, vector<8x1xf32>
    %5 = vector.broadcast %4 : vector<8x1xf32> to vector<8x256xf32>
    %6 = arith.addf %3, %5 : vector<8x256xf32>
    %cst_6 = arith.constant 5.000000e-01 : f32
    %7 = vector.broadcast %cst_6 : f32 to vector<8x256xf32>
    %8 = arith.mulf %7, %6 : vector<8x256xf32>
    %cst_7 = arith.constant 0.707106769 : f32
    %9 = vector.broadcast %cst_7 : f32 to vector<8x256xf32>
    %10 = arith.mulf %6, %9 : vector<8x256xf32>
    %11 = math.erf %10 : vector<8x256xf32>
    %cst_8 = arith.constant 1.000000e+00 : f32
    %12 = vector.broadcast %cst_8 : f32 to vector<8x256xf32>
    %13 = arith.addf %12, %11 : vector<8x256xf32>
    %14 = arith.mulf %8, %13 : vector<8x256xf32>
    %c0_9 = arith.constant 0 : index
    %c0_10 = arith.constant 0 : index
    %15 = vector.load %arg4[%c0_9, %c0_10] : memref<16x8xf32, #tpu.memory_space<vmem>>, vector<16x8xf32>
    %cst_11 = arith.constant dense<0.000000e+00> : vector<16x256xf32>
    %16 = tpu.matmul %15, %14, %cst_11 {dimension_numbers = #tpu.dot_dimension_numbers<[1], [0], [0], [1], [0, 0, 1, 1], [], []>} : vector<16x8xf32>, vector<8x256xf32>, vector<16x256xf32> -> vector<16x256xf32>
    %c0_12 = arith.constant 0 : index
    %c0_13 = arith.constant 0 : index
    %17 = vector.load %arg5[%c0_12, %c0_13] : memref<16x1xf32, #tpu.memory_space<vmem>>, vector<16x1xf32>
    %18 = vector.broadcast %17 : vector<16x1xf32> to vector<16x256xf32>
    %19 = arith.addf %16, %18 : vector<16x256xf32>
    %cst_14 = arith.constant 5.000000e-01 : f32
    %20 = vector.broadcast %cst_14 : f32 to vector<16x256xf32>
    %21 = arith.mulf %20, %19 : vector<16x256xf32>
    %cst_15 = arith.constant 0.707106769 : f32
    %22 = vector.broadcast %cst_15 : f32 to vector<16x256xf32>
    %23 = arith.mulf %19, %22 : vector<16x256xf32>
    %24 = math.erf %23 : vector<16x256xf32>
    %cst_16 = arith.constant 1.000000e+00 : f32
    %25 = vector.broadcast %cst_16 : f32 to vector<16x256xf32>
    %26 = arith.addf %25, %24 : vector<16x256xf32>
    %27 = arith.mulf %21, %26 : vector<16x256xf32>
    %c17_i32 = arith.constant 17 : i32
    %28 = tpu.dynamic_rotate %14 by %c17_i32 dim 1 : vector<8x256xf32>, i32 -> vector<8x256xf32>
    %c0_17 = arith.constant 0 : index
    %c0_18 = arith.constant 0 : index
    %29 = vector.load %arg8[%c0_17, %c0_18] : memref<9x256xf32, #tpu.memory_space<vmem>>, vector<1x256xf32>
    %30 = vector.broadcast %29 : vector<1x256xf32> to vector<8x256xf32>
    %31 = arith.mulf %28, %30 : vector<8x256xf32>
    %c16_i32 = arith.constant 16 : i32
    %32 = tpu.dynamic_rotate %14 by %c16_i32 dim 1 : vector<8x256xf32>, i32 -> vector<8x256xf32>
    %c1 = arith.constant 1 : index
    %c0_19 = arith.constant 0 : index
    %33 = vector.load %arg8[%c1, %c0_19] : memref<9x256xf32, #tpu.memory_space<vmem>>, vector<1x256xf32>
    %34 = vector.broadcast %33 : vector<1x256xf32> to vector<8x256xf32>
    %35 = arith.mulf %32, %34 : vector<8x256xf32>
    %c15_i32 = arith.constant 15 : i32
    %36 = tpu.dynamic_rotate %14 by %c15_i32 dim 1 : vector<8x256xf32>, i32 -> vector<8x256xf32>
    %c2 = arith.constant 2 : index
    %c0_20 = arith.constant 0 : index
    %37 = vector.load %arg8[%c2, %c0_20] : memref<9x256xf32, #tpu.memory_space<vmem>>, vector<1x256xf32>
    %38 = vector.broadcast %37 : vector<1x256xf32> to vector<8x256xf32>
    %39 = arith.mulf %36, %38 : vector<8x256xf32>
    %c1_i32 = arith.constant 1 : i32
    %40 = tpu.dynamic_rotate %14 by %c1_i32 dim 1 : vector<8x256xf32>, i32 -> vector<8x256xf32>
    %c3 = arith.constant 3 : index
    %c0_21 = arith.constant 0 : index
    %41 = vector.load %arg8[%c3, %c0_21] : memref<9x256xf32, #tpu.memory_space<vmem>>, vector<1x256xf32>
    %42 = vector.broadcast %41 : vector<1x256xf32> to vector<8x256xf32>
    %43 = arith.mulf %40, %42 : vector<8x256xf32>
    %c4 = arith.constant 4 : index
    %c0_22 = arith.constant 0 : index
    %44 = vector.load %arg8[%c4, %c0_22] : memref<9x256xf32, #tpu.memory_space<vmem>>, vector<1x256xf32>
    %45 = vector.broadcast %44 : vector<1x256xf32> to vector<8x256xf32>
    %46 = arith.mulf %14, %45 : vector<8x256xf32>
    %c255_i32 = arith.constant 255 : i32
    %47 = tpu.dynamic_rotate %14 by %c255_i32 dim 1 : vector<8x256xf32>, i32 -> vector<8x256xf32>
    %c5 = arith.constant 5 : index
    %c0_23 = arith.constant 0 : index
    %48 = vector.load %arg8[%c5, %c0_23] : memref<9x256xf32, #tpu.memory_space<vmem>>, vector<1x256xf32>
    %49 = vector.broadcast %48 : vector<1x256xf32> to vector<8x256xf32>
    %50 = arith.mulf %47, %49 : vector<8x256xf32>
    %c241_i32 = arith.constant 241 : i32
    %51 = tpu.dynamic_rotate %14 by %c241_i32 dim 1 : vector<8x256xf32>, i32 -> vector<8x256xf32>
    %c6 = arith.constant 6 : index
    %c0_24 = arith.constant 0 : index
    %52 = vector.load %arg8[%c6, %c0_24] : memref<9x256xf32, #tpu.memory_space<vmem>>, vector<1x256xf32>
    %53 = vector.broadcast %52 : vector<1x256xf32> to vector<8x256xf32>
    %54 = arith.mulf %51, %53 : vector<8x256xf32>
    %c240_i32 = arith.constant 240 : i32
    %55 = tpu.dynamic_rotate %14 by %c240_i32 dim 1 : vector<8x256xf32>, i32 -> vector<8x256xf32>
    %c7 = arith.constant 7 : index
    %c0_25 = arith.constant 0 : index
    %56 = vector.load %arg8[%c7, %c0_25] : memref<9x256xf32, #tpu.memory_space<vmem>>, vector<1x256xf32>
    %57 = vector.broadcast %56 : vector<1x256xf32> to vector<8x256xf32>
    %58 = arith.mulf %55, %57 : vector<8x256xf32>
    %c239_i32 = arith.constant 239 : i32
    %59 = tpu.dynamic_rotate %14 by %c239_i32 dim 1 : vector<8x256xf32>, i32 -> vector<8x256xf32>
    %c8 = arith.constant 8 : index
    %c0_26 = arith.constant 0 : index
    %60 = vector.load %arg8[%c8, %c0_26] : memref<9x256xf32, #tpu.memory_space<vmem>>, vector<1x256xf32>
    %61 = vector.broadcast %60 : vector<1x256xf32> to vector<8x256xf32>
    %62 = arith.mulf %59, %61 : vector<8x256xf32>
    %63 = tpu.concatenate %31, %35, %39, %43, %46, %50, %54, %58, %62 in 0 : vector<8x256xf32>, vector<8x256xf32>, vector<8x256xf32>, vector<8x256xf32>, vector<8x256xf32>, vector<8x256xf32>, vector<8x256xf32>, vector<8x256xf32>, vector<8x256xf32> -> vector<72x256xf32>
    %c0_27 = arith.constant 0 : index
    %c0_28 = arith.constant 0 : index
    %64 = vector.load %arg6[%c0_27, %c0_28] : memref<16x72xf32, #tpu.memory_space<vmem>>, vector<16x72xf32>
    %cst_29 = arith.constant dense<0.000000e+00> : vector<16x256xf32>
    %65 = tpu.matmul %64, %63, %cst_29 {dimension_numbers = #tpu.dot_dimension_numbers<[1], [0], [0], [1], [0, 0, 1, 1], [], []>} : vector<16x72xf32>, vector<72x256xf32>, vector<16x256xf32> -> vector<16x256xf32>
    %c0_30 = arith.constant 0 : index
    %c0_31 = arith.constant 0 : index
    %66 = vector.load %arg7[%c0_30, %c0_31] : memref<16x1xf32, #tpu.memory_space<vmem>>, vector<16x1xf32>
    %67 = vector.broadcast %66 : vector<16x1xf32> to vector<16x256xf32>
    %68 = arith.addf %65, %67 : vector<16x256xf32>
    %cst_32 = arith.constant 5.000000e-01 : f32
    %69 = vector.broadcast %cst_32 : f32 to vector<16x256xf32>
    %70 = arith.mulf %69, %68 : vector<16x256xf32>
    %cst_33 = arith.constant 0.707106769 : f32
    %71 = vector.broadcast %cst_33 : f32 to vector<16x256xf32>
    %72 = arith.mulf %68, %71 : vector<16x256xf32>
    %73 = math.erf %72 : vector<16x256xf32>
    %cst_34 = arith.constant 1.000000e+00 : f32
    %74 = vector.broadcast %cst_34 : f32 to vector<16x256xf32>
    %75 = arith.addf %74, %73 : vector<16x256xf32>
    %76 = arith.mulf %70, %75 : vector<16x256xf32>
    %77 = tpu.concatenate %27, %76 in 0 : vector<16x256xf32>, vector<16x256xf32> -> vector<32x256xf32>
    %c0_35 = arith.constant 0 : index
    %c0_36 = arith.constant 0 : index
    %c0_37 = arith.constant 0 : index
    %78 = vector.load %arg9[%c0_35, %c0_36, %c0_37] : memref<1x32x256xf32, #tpu.memory_space<vmem>>, vector<1x32x256xf32>
    %79 = vector.shape_cast %78 : vector<1x32x256xf32> to vector<32x256xf32>
    %80 = vector.shape_cast %77 : vector<32x256xf32> to vector<1x32x256xf32>
    tpu.vector_store %arg9[%c0_35, %c0_36, %c0_37], %80 {strides = array<i32>} : memref<1x32x256xf32, #tpu.memory_space<vmem>>, vector<1x32x256xf32>,
    return
  }
  func.func @transform_0(%arg0: i32) -> (i32, i32, i32) {
    %c0_i32 = arith.constant 0 : i32
    %c0_i32_0 = arith.constant 0 : i32
    %c0_i32_1 = arith.constant 0 : i32
    return %arg0, %c0_i32, %c0_i32_0 : i32, i32, i32
  }
  func.func @transform_1(%arg0: i32) -> (i32, i32) {
    %c0_i32 = arith.constant 0 : i32
    %c0_i32_0 = arith.constant 0 : i32
    %c0_i32_1 = arith.constant 0 : i32
    return %c0_i32, %c0_i32_0 : i32, i32
  }
  func.func @transform_2(%arg0: i32) -> (i32, i32) {
    %c0_i32 = arith.constant 0 : i32
    %c0_i32_0 = arith.constant 0 : i32
    %c0_i32_1 = arith.constant 0 : i32
    return %c0_i32, %c0_i32_0 : i32, i32
  }
  func.func @transform_3(%arg0: i32) -> (i32, i32) {
    %c0_i32 = arith.constant 0 : i32
    %c0_i32_0 = arith.constant 0 : i32
    %c0_i32_1 = arith.constant 0 : i32
    return %c0_i32, %c0_i32_0 : i32, i32
  }
  func.func @transform_4(%arg0: i32) -> (i32, i32) {
    %c0_i32 = arith.constant 0 : i32
    %c0_i32_0 = arith.constant 0 : i32
    %c0_i32_1 = arith.constant 0 : i32
    return %c0_i32, %c0_i32_0 : i32, i32
  }
  func.func @transform_5(%arg0: i32) -> (i32, i32) {
    %c0_i32 = arith.constant 0 : i32
    %c0_i32_0 = arith.constant 0 : i32
    %c0_i32_1 = arith.constant 0 : i32
    return %c0_i32, %c0_i32_0 : i32, i32
  }
  func.func @transform_6(%arg0: i32) -> (i32, i32) {
    %c0_i32 = arith.constant 0 : i32
    %c0_i32_0 = arith.constant 0 : i32
    %c0_i32_1 = arith.constant 0 : i32
    return %c0_i32, %c0_i32_0 : i32, i32
  }
  func.func @transform_7(%arg0: i32) -> (i32, i32) {
    %c0_i32 = arith.constant 0 : i32
    %c0_i32_0 = arith.constant 0 : i32
    %c0_i32_1 = arith.constant 0 : i32
    return %c0_i32, %c0_i32_0 : i32, i32
  }
  func.func @transform_8(%arg0: i32) -> (i32, i32, i32) {
    %c0_i32 = arith.constant 0 : i32
    %c0_i32_0 = arith.constant 0 : i32
    %c0_i32_1 = arith.constant 0 : i32
    return %arg0, %c0_i32, %c0_i32_0 : i32, i32, i32
  }
}

</mosaic_0001>

<bundles_post_ra>
// kernel: tpu_custom_call.1
= control target key start
LH: loop header
LB: loop body
LE: loop exit
PB: predicated region body
PF: predicated region fallthrough
CT: control target
= control target key end

     0   :  { %13 = vsyncpa [#allocation3], 0  ;;  %s1423_s0 = inlined_call_operand.vmem [shape: f32[2,4,256], index: 0, kind: input, shape index: {}]   ;;  %s1424_s1 = inlined_call_operand.vmem [shape: f32[8,4], index: 1, kind: input, shape index: {}]   ;;  %s1425_s2 = inlined_call_operand.vmem [shape: f32[8,1], index: 2, kind: input, shape index: {}]   ;;  %s1426_s3 = inlined_call_operand.vmem [shape: f32[16,8], index: 3, kind: input, shape index: {}]   ;;  %s1427_s4 = inlined_call_operand.vmem [shape: f32[16,1], index: 4, kind: input, shape index: {}]   ;;  %s1428_s5 = inlined_call_operand.vmem [shape: f32[16,72], index: 5, kind: input, shape index: {}]   ;;  %s1429_s6 = inlined_call_operand.vmem [shape: f32[16,1], index: 6, kind: input, shape index: {}]   ;;  %s1430_s7 = inlined_call_operand.vmem [shape: f32[9,256], index: 7, kind: input, shape index: {}]   ;;  %s1431_s8 = inlined_call_operand.hbm [shape: f32[2,32,256], index: 8, kind: output, shape index: {}]  }
   0x1   :  { %15 = vsyncpa [#allocation3 + $0x1], 0  ;;  %s1165_s27 = smov 0   ;;  %s1167_s28 = smov 0  }
   0x2   :  { %s1169_s29 = smov 0   ;;  %s1171_s30 = smov 0  }
   0x3 LB: > { %s1186_s9 = sadd.s32 4294967295, %s1106_s30   ;;  %s916_s10 = sadd.s32 4294967294, %s1106_s30   ;;  %s1106_s30 = sphi %s1171_s30, %s1437_s30   ;;  %s1102_s29 = sphi %s1169_s29, %s1436_s29   ;;  %s1098_s28 = sphi %s1167_s28, %s1435_s28   ;;  %s1094_s27 = sphi %s1165_s27, %s1434_s27  }
   0x4   : > { %s1190_s11 = sadd.s32 1, %s1106_s30   ;;  %s201_s12 = sadd.s32 1, %s1102_s29 }
   0x5   : > { %s198_s13 = ssub.s32 %s1106_s30, %s1190_s11  ;;  %p211_p0 = scmp.ne.s32.totalorder %s1102_s29, %s1098_s28 }
   0x6   : > { %p199_p1 = scmp.eq.s32.totalorder %s198_s13, 0  ;;  %p212_p2 = scmp.eq.s32.totalorder %s1186_s9, 1 }
   0x7   : > { %p217_p3 = scmp.ne.s32.totalorder %s1098_s28, %s1094_s27  ;;  %p218_p4 = scmp.eq.s32.totalorder %s916_s10, 1 }
   0x8   : > { %s1201_s14 = scalar_select %p199_p1, %s1102_s29, %s201_s12  }
   0x9   : > { %p1203_p5 = por %p212_p2, %p211_p0  ;;  %p1207_p6 = por %p218_p4, %p217_p3 }
   0xa   : > { %p919_p7 = scmp.ge.s32.totalorder %s1106_s30, 1  ;;  %p265_p8 = scmp.lt.s32.totalorder %s1106_s30, 3 }
   0xc   : > { %p266_p9 = pnand %p919_p7, %p265_p8 }
   0xd   : > { %p299_p10 = scmp.lt.s32.totalorder (!%p266_p9), %s1186_s9, 1  ;;  %v1108_v0 = vmov (!%p266_p9), 0.0   ;;  %v1109_v1 = vmov (!%p266_p9), 0   ;;  %v306_v2 = vld [vmem:[%s1425_s2] sm:$0xff] (!%p266_p9)  ;;  %vm318_vm0 = vcmask (!%p266_p9), 1043456   ;;  %vm314_vm1 = vcmask (!%p266_p9), 31744  }
   0xe   : > { %269 = sbr.rel (%p266_p9) target bundleno = 660 (0x294), region = 52  ;;  %387 = vmatprep.mubr.f32.mxu0 (!%p266_p9), %v1108_v0  ;;  %1021 = vset.pattern.permute.xlu0 (!%p266_p9), %v1109_v1  ;;  %v305_v5 = vld [vmem:[%s1424_s1] sm:$0xff] (!%p266_p9)  ;;  %s1110_s26 = smov (!%p266_p9), 16   ;;  %vm418_vm2 = vcmask (!%p266_p9), 64512   ;;  %v405_v22 = vld [vmem:[%s1426_s3 + $0x8] sm:$0xff] (!%p266_p9)  ;;  %v526_v27 = vlaneseq (!%p266_p9)  ;;  %vm728_vm11 = vcmask (!%p266_p9), 588800  }
   0xf   : > { %309 = vperm.xlu0 (!%p266_p9), %1021, %v306_v2   ;;  %489 = vmatprep.mubr.f32.mxu1 (!%p266_p9), %v1108_v0  ;;  %s1111_s10 = smov (!%p266_p9), 17   ;;  %v404_v21 = vld [vmem:[%s1426_s3] sm:$0xff] (!%p266_p9)  ;;  %s1112_s17 = smov (!%p266_p9), 15   ;;  %v407_v23 = vld [vmem:[%s1427_s4 + $0x8] sm:$0xff] (!%p266_p9) }
  0x10   : > { %1022 = vset.pattern.permute.xlu1 (!%p266_p9), %v1109_v1  ;;  %s1114_s21 = smov (!%p266_p9), 127   ;;  %s1115_s22 = smov (!%p266_p9), 113   ;;  %v717_v24 = vld [vmem:[%s1429_s6 + $0x8] sm:$0xff] (!%p266_p9)  ;;  %v406_v25 = vld [vmem:[%s1427_s4] sm:$0xff] (!%p266_p9)  ;;  %v1266_v30 = vand.u32 (!%p266_p9), 127, %v526_v27  ;;  %v534_v31 = vshrl.u32 (!%p266_p9), %v526_v27, 7 }
  0x11   : > { %s1117_s24 = smov (!%p266_p9), 111   ;;  %v716_v26 = vld [vmem:[%s1429_s6] sm:$0xff] (!%p266_p9)  ;;  %s1118_s13 = smov (!%p266_p9), [#allocation2]  }
  0x12   : > { %v928_v34 = vld [vmem:[%s1430_s7 + $0x1] ss:$8 sm:$0x3] (!%p266_p9)  ;;  %v1271_v35 = vsub.s32 (!%p266_p9), 0, %v534_v31  ;;  %v1273_v36 = vsub.s32 (!%p266_p9), 1, %v534_v31  ;;  %vm549_vm3 = vcmp.lt.s32.totalorder (!%p266_p9), %v1266_v30, 16 }
  0x13   : > { %v531_v37 = vld [vmem:[%s1430_s7] ss:$8 sm:$0x3] (!%p266_p9)  ;;  %v930_v38 = vld [vmem:[%s1430_s7 + $0x3] ss:$8 sm:$0x3] (!%p266_p9) }
  0x14   : > { %v558_v39 = vrot.slane (!%p266_p9), %v928_v34, %v1271_v35  ;;  %v562_v40 = vrot.slane (!%p266_p9), %v928_v34, %v1273_v36  ;;  %v929_v42 = vld [vmem:[%s1430_s7 + $0x2] ss:$8 sm:$0x3] (!%p266_p9)  ;;  %vm571_vm4 = vcmp.lt.s32.totalorder (!%p266_p9), %v1266_v30, 15  ;;  %vm528_vm5 = vcmp.lt.s32.totalorder (!%p266_p9), %v1266_v30, 17 }
  0x15   : > { %s300_s19 = scalar_select %p299_p10, %s1186_s9, 1  ;;  %v932_v46 = vld [vmem:[%s1430_s7 + $0x5] ss:$8 sm:$0x3]  ;;  %v536_v47 = vrot.slane %v531_v37, %v1271_v35  ;;  %v540_v48 = vrot.slane %v531_v37, %v1273_v36  ;;  %vm593_vm6 = vcmp.lt.s32.totalorder %v1266_v30, 1  ;;  %v606_v49 = vrot.slane %v930_v38, %v1273_v36 }
  0x16   : > { %v584_v50 = vrot.slane %v929_v42, %v1273_v36  ;;  %v602_v51 = vrot.slane %v930_v38, %v1271_v35  ;;  %v931_v56 = vld [vmem:[%s1430_s7 + $0x4] ss:$8 sm:$0x3]  ;;  %vm630_vm7 = vcmp.lt.s32.totalorder %v1266_v30, 127  ;;  %v643_v57 = vrot.slane %v932_v46, %v1273_v36 }
  0x17   : > { %s943_s20 = sshll.u32 %s300_s19, 3  ;;  %v580_v2 = vrot.slane %v929_v42, %v1271_v35  ;;  %vm652_vm8 = vcmp.lt.s32.totalorder %v1266_v30, 113  ;;  %vm674_vm9 = vcmp.lt.s32.totalorder %v1266_v30, 112  ;;  %vm696_vm10 = vcmp.lt.s32.totalorder %v1266_v30, 111  ;;  %s296_s19 = sand.u32 1, %s1098_s28  }
  0x18   : > { %s303_s23 = scalar_lea.vmem %s1423_s0, %s943_s20  ;;  %s1113_s20 = smov 1  }
  0x19   : > { %v304_v3 = vld [vmem:[%s303_s23] sm:$0xff]  ;;  %s1116_s23 = smov 112  }
  0x1a   : > { %v313_v4 = vcombine.high %v304_v3, %v304_v3 }
  0x1c   : > { %923 = vmatprep.subr.msk.mxu0 %vm318_vm0, %v313_v4 }
  0x1d   : > { %924 = vmatpush1.msk.msra.mxu0 %vm318_vm0, %v304_v3  ;;  %v621_v3 = vrot.slane %v931_v56, %v1273_v36 }
  0x1e   : > { %925 = vmatmul.mubr.msk.f32.vlgmr.msra.gmra.mrb[0].mxu0 %vm314_vm1, %v305_v5 }
  0x1f   : > { %799 = vmatprep.mubr.f32.mxu0 %v1108_v0 }
  0x8e   : > { %v310_v6 = vpop.permute.xlu0 %309 }
  0xf1   : > { %v389_v7 = vpop.f32.mrb[0].mxu0 }
  0xf2   : > { %v390_v8 = vadd.f32 %v389_v7, %v310_v6  ;;  %v391_v9 = vpop.f32.mrb[1].mxu0 }
  0xf3   : > { %v392_v10 = vadd.f32 %v391_v9, %v310_v6 }
  0xf4   : > { %v396_v11 = vmul.f32 0.70710677, %v390_v8  ;;  %v394_v15 = vmul.f32 0.5, %v390_v8 }
  0xf5   : > { %v397_v12 = vmul.f32 0.70710677, %v392_v10  ;;  %v395_v17 = vmul.f32 0.5, %v392_v10 }
  0xf6   : > { %1024 = verf.f32 %v396_v11  ;;  %v639_v11 = vrot.slane %v932_v46, %v1271_v35 }
  0xf7   : > { %1026 = verf.f32 %v397_v12 }
 0x100   : > { %v1025_v13 = vpop.eup %1024 }
 0x101   : > { %v1027_v14 = vpop.eup %1026  ;;  %v400_v16 = vadd.f32 1.0, %v1025_v13 }
 0x102   : > { %v401_v18 = vadd.f32 1.0, %v1027_v14 }
 0x103   : > { %v1224_v19 = vmul.f32 %v400_v16, %v394_v15  ;;  %v933_v16 = vld [vmem:[%s1430_s7 + $0x6] ss:$8 sm:$0x3] }
 0x104   : > { %v1226_v20 = vmul.f32 %v401_v18, %v395_v17  ;;  %v617_v18 = vrot.slane %v931_v56, %v1271_v35  ;;  %v661_v27 = vrot.slane %v933_v16, %v1271_v35 }
 0x105   : > { %545 = vrot.lane.b32.xlu1 %v1224_v19, %s1110_s26  ;;  %522 = vrot.lane.b32.xlu0 %v1224_v19, %s1111_s10 }
 0x106   : > { %425 = vmatprep.subr.mxu1 %v1226_v20  ;;  %v624_v34 = vmul.f32 %v617_v18, %v1224_v19 }
 0x107   : > { %426 = vmatpush1.msra.mxu1 %v1224_v19 }
 0x108   : > { %926 = vmatmul.mubr.msk.f32.vlgmr.msra.gmra.mrb[0].mxu1 %vm418_vm2, %v404_v21  ;;  %v934_v21 = vld [vmem:[%s1430_s7 + $0x7] ss:$8 sm:$0x3] }
 0x109   : > { %567 = vrot.lane.b32.xlu1 %v1224_v19, %s1112_s17  ;;  %547 = vrot.lane.b32.xlu0 %v1226_v20, %s1110_s26  ;;  %v683_v31 = vrot.slane %v934_v21, %v1271_v35 }
 0x10a   : > { %495 = vmatprep.mubr.f32.mxu1 %v1108_v0 }
 0x10c   : > { %927 = vmatmul.mubr.msk.f32.gmra.mrb[2].mxu1 %vm418_vm2, %v405_v22 }
 0x10d   : > { %589 = vrot.lane.b32.xlu1 %v1224_v19, %s1113_s20  ;;  %569 = vrot.lane.b32.xlu0 %v1226_v20, %s1112_s17  ;;  %s1048_s17 = sshll.u32 %s1118_s13, 4  ;;  %s1049_s17 = int_to_ptr.vmem [resolvable:$false] %s1048_s17 }
 0x10e   : > { %805 = vmatprep.mubr.f32.mxu1 %v1108_v0  ;;  %s1050_s18 = scalar_lea.vmem %s1049_s17, 2048 }
 0x111   : > { %524 = vrot.lane.b32.xlu1 %v1226_v20, %s1111_s10  ;;  %591 = vrot.lane.b32.xlu0 %v1226_v20, %s1113_s20  ;;  %s920_s20 = sshll.u32 %s296_s19, 6 }
 0x115   : > { %626 = vrot.lane.b32.xlu1 %v1224_v19, %s1114_s21  ;;  %628 = vrot.lane.b32.xlu0 %v1226_v20, %s1114_s21  ;;  %s1360_s21 = scalar_lea.vmem [#allocation2], %s920_s20 }
 0x119   : > { %648 = vrot.lane.b32.xlu1 %v1224_v19, %s1115_s22  ;;  %650 = vrot.lane.b32.xlu0 %v1226_v20, %s1115_s22  ;;  %s944_s22 = sshll.u32 %s1186_s9, 10  ;;  %s1381_s9 = scalar_lea.sflag [#allocation3], %s296_s19 }
 0x11a   : > { %s1372_s10 = scalar_lea.hbm %s1431_s8, %s944_s22 }
 0x11d   : > { %670 = vrot.lane.b32.xlu1 %v1224_v19, %s1116_s23  ;;  %672 = vrot.lane.b32.xlu0 %v1226_v20, %s1116_s23  ;;  %s854_s23 = sshll.u32 %s1360_s21, 4  ;;  %s1375_s23 = int_to_ptr.vmem [resolvable:$true] %s854_s23 }
 0x11e   : > { %s1044_s12 = scalar_lea.vmem %s1375_s23, 1024  ;;  %p1051_p0 = scmp.lt.s32.totalorder %s1375_s23, %s1049_s17 }
 0x11f   : > { %p1045_p11 = scmp.ne.s32.totalorder %s1375_s23, %s1044_s12  ;;  %p1052_p1 = scmp.lt.s32.totalorder %s1050_s18, %s1044_s12 }
 0x121   : > { %692 = vrot.lane.b32.xlu1 %v1224_v19, %s1117_s24  ;;  %694 = vrot.lane.b32.xlu0 %v1226_v20, %s1117_s24  ;;  %p1046_p12 = pnand %p1045_p11, %p1203_p5  ;;  %p1053_p2 = por %p1052_p1, %p1051_p0 }
 0x123   : > { %p1047_p13 = pneg %p1046_p12 }
 0x125   : > { %415 = vperm.xlu0 %1021, %v407_v23   ;;  %410 = vperm.xlu1 %1022, %v406_v25   ;;  %p1054_p3 = pnand %p1053_p2, %p1047_p13 }
 0x129   : > { %725 = vperm.xlu0 %1021, %v717_v24   ;;  %720 = vperm.xlu1 %1022, %v716_v26   ;;  %v625_v24 = vmul.f32 %v621_v3, %v1226_v20 }
 0x177   : > { %v546_v28 = vpop.permute.xlu1 %545  ;;  %v523_v29 = vpop.permute.xlu0 %522 }
 0x17b   : > { %v568_v32 = vpop.permute.xlu1 %567  ;;  %v548_v33 = vpop.permute.xlu0 %547 }
 0x17c   : > { %v550_v44 = vsel %vm549_vm3, %v546_v28, %v548_v33  ;;  %v551_v45 = vsel %vm549_vm3, %v548_v33, %v546_v28  ;;  %v665_v28 = vrot.slane %v933_v16, %v1273_v36  ;;  %v935_v33 = vld [vmem:[%s1430_s7 + $0x10] ss:$8 sm:$0x3] }
 0x17d   : > { %v565_v52 = vmul.f32 %v558_v39, %v551_v45  ;;  %v566_v53 = vmul.f32 %v562_v40, %v550_v44 }
 0x17f   : > { %v590_v41 = vpop.permute.xlu1 %589  ;;  %v570_v43 = vpop.permute.xlu0 %569 }
 0x180   : > { %v572_v58 = vsel %vm571_vm4, %v568_v32, %v570_v43  ;;  %v573_v4 = vsel %vm571_vm4, %v570_v43, %v568_v32  ;;  %v687_v32 = vrot.slane %v934_v21, %v1273_v36  ;;  %v709_v43 = vrot.slane %v935_v33, %v1273_v36 }
 0x181   : > { %v588_v5 = vmul.f32 %v584_v50, %v572_v58  ;;  %v587_v17 = vmul.f32 %v580_v2, %v573_v4 }
 0x183   : > { %v525_v54 = vpop.permute.xlu1 %524  ;;  %v592_v55 = vpop.permute.xlu0 %591 }
 0x184   : > { %v529_v59 = vsel %vm528_vm5, %v523_v29, %v525_v54  ;;  %v530_v60 = vsel %vm528_vm5, %v525_v54, %v523_v29  ;;  %v594_v61 = vsel %vm593_vm6, %v590_v41, %v592_v55  ;;  %v595_v0 = vsel %vm593_vm6, %v592_v55, %v590_v41  ;;  %v714_v55 = vld [vmem:[%s1428_s5] sm:$0xff] }
 0x185   : > { %v543_v62 = vmul.f32 %v536_v47, %v530_v60  ;;  %v544_v63 = vmul.f32 %v540_v48, %v529_v59  ;;  %v610_v1 = vmul.f32 %v606_v49, %v594_v61  ;;  %v609_v10 = vmul.f32 %v602_v51, %v595_v0 }
 0x186   : > { %v705_v51 = vrot.slane %v935_v33, %v1271_v35  ;;  %v715_v35 = vld [vmem:[%s1428_s5 + $0x8] sm:$0xff] }
 0x187   : > { %v947_v6 = vpack.c.bf16 %v565_v52, %v543_v62  ;;  %v627_v7 = vpop.permute.xlu1 %626  ;;  %v629_v8 = vpop.permute.xlu0 %628  ;;  %v945_v9 = vpack.c.bf16 %v566_v53, %v544_v63  ;;  %v949_v15 = vpack.c.bf16 %v610_v1, %v588_v5  ;;  %v951_v25 = vpack.c.bf16 %v609_v10, %v587_v17 }
 0x188   : > { %v632_v12 = vsel %vm630_vm7, %v629_v8, %v627_v7  ;;  %v631_v13 = vsel %vm630_vm7, %v627_v7, %v629_v8 }
 0x189   : > { %v647_v14 = vmul.f32 %v643_v57, %v632_v12  ;;  %946 = vmatprep.subr.bf16.mxu0 %v945_v9  ;;  %961 = vmatprep.subr.bf16.mxu1 %v945_v9  ;;  %v646_v26 = vmul.f32 %v639_v11, %v631_v13 }
 0x18a   : > { %948 = vmatpush1.bf16.msra.mxu0 %v947_v6  ;;  %966 = vmatpush1.bf16.msra.mxu1 %v947_v6 }
 0x18b   : > { %v649_v22 = vpop.permute.xlu1 %648  ;;  %950 = vmatprep.subr.bf16.mxu0 %v949_v15  ;;  %v651_v23 = vpop.permute.xlu0 %650  ;;  %962 = vmatprep.subr.bf16.mxu1 %v949_v15  ;;  %v953_v29 = vpack.c.bf16 %v647_v14, %v625_v24  ;;  %v955_v40 = vpack.c.bf16 %v646_v26, %v624_v34 }
 0x18c   : > { %v653_v20 = vsel %vm652_vm8, %v649_v22, %v651_v23  ;;  %v654_v37 = vsel %vm652_vm8, %v651_v23, %v649_v22 }
 0x18d   : > { %v668_v19 = vmul.f32 %v661_v27, %v653_v20  ;;  %v669_v44 = vmul.f32 %v665_v28, %v654_v37 }
 0x18e   : > { %952 = vmatpush1.bf16.msra.mxu0 %v951_v25  ;;  %967 = vmatpush1.bf16.msra.mxu1 %v951_v25 }
 0x18f   : > { %v671_v38 = vpop.permute.xlu1 %670  ;;  %954 = vmatprep.subr.bf16.mxu0 %v953_v29  ;;  %v673_v39 = vpop.permute.xlu0 %672  ;;  %963 = vmatprep.subr.bf16.mxu1 %v953_v29 }
 0x190   : > { %v675_v41 = vsel %vm674_vm9, %v671_v38, %v673_v39  ;;  %v676_v42 = vsel %vm674_vm9, %v673_v39, %v671_v38 }
 0x191   : > { %v690_v45 = vmul.f32 %v683_v31, %v675_v41  ;;  %v691_v46 = vmul.f32 %v687_v32, %v676_v42 }
 0x192   : > { %956 = vmatpush1.bf16.msra.mxu0 %v955_v40  ;;  %968 = vmatpush1.bf16.msra.mxu1 %v955_v40 }
 0x193   : > { %v959_v47 = vpack.c.bf16 %v690_v45, %v668_v19  ;;  %v693_v48 = vpop.permute.xlu1 %692  ;;  %v695_v49 = vpop.permute.xlu0 %694  ;;  %v957_v50 = vpack.c.bf16 %v691_v46, %v669_v44 }
 0x194   : > { %v698_v52 = vsel %vm696_vm10, %v695_v49, %v693_v48  ;;  %v697_v53 = vsel %vm696_vm10, %v693_v48, %v695_v49 }
 0x195   : > { %v713_v54 = vmul.f32 %v709_v43, %v698_v52  ;;  %958 = vmatprep.subr.bf16.mxu0 %v957_v50  ;;  %964 = vmatprep.subr.bf16.mxu1 %v957_v50  ;;  %v712_v36 = vmul.f32 %v705_v51, %v697_v53 }
 0x196   : > { %960 = vmatpush1.bf16.msra.mxu0 %v959_v47  ;;  %969 = vmatpush1.bf16.msra.mxu1 %v959_v47 }
 0x197   : > { %751 = vmatprep.subr.mxu0 %v713_v54  ;;  %965 = vmatprep.subr.mxu1 %v713_v54 }
 0x19a   : > { %752 = vmatpush1.msra.mxu0 %v712_v36  ;;  %970 = vmatpush1.msra.mxu1 %v712_v36 }
 0x19b   : > { %936 = vmatmul.mubr.msk.f32.vlgmr.msra.gmra.mrb[2].mxu0 %vm728_vm11, %v714_v55  ;;  %937 = vmatmul.mubr.msk.f32.vlgmr.msra.gmra.mrb[4].mxu1 %vm728_vm11, %v715_v35 }
 0x1a4   : > { %v411_v30 = vpop.permute.xlu1 %410  ;;  %v416_v61 = vpop.permute.xlu0 %415 }
 0x1a8   : > { %v726_v23 = vpop.permute.xlu0 %725  ;;  %v721_v24 = vpop.permute.xlu1 %720 }
 0x1db   : > { %v491_v56 = vpop.f32.mrb[0].mxu1 }
 0x1dc   : > { %v493_v57 = vpop.f32.mrb[1].mxu1  ;;  %v492_v58 = vadd.f32 %v491_v56, %v411_v30 }
 0x1dd   : > { %v494_v59 = vadd.f32 %v493_v57, %v411_v30 }
 0x1de   : > { %v506_v60 = vmul.f32 0.70710677, %v492_v58  ;;  %v502_v5 = vmul.f32 0.5, %v492_v58 }
 0x1df   : > { %v497_v62 = vpop.f32.mrb[2].mxu1  ;;  %v507_v63 = vmul.f32 0.70710677, %v494_v59  ;;  %v503_v7 = vmul.f32 0.5, %v494_v59 }
 0x1e0   : > { %v498_v0 = vadd.f32 %v497_v62, %v416_v61  ;;  %v499_v1 = vpop.f32.mrb[3].mxu1  ;;  %1028 = verf.f32 %v506_v60 }
 0x1e1   : > { %v500_v2 = vadd.f32 %v499_v1, %v416_v61  ;;  %1030 = verf.f32 %v507_v63 }
 0x1e2   : > { %v508_v3 = vmul.f32 0.70710677, %v498_v0  ;;  %v504_v15 = vmul.f32 0.5, %v498_v0 }
 0x1e3   : > { %v509_v4 = vmul.f32 0.70710677, %v500_v2  ;;  %v505_v17 = vmul.f32 0.5, %v500_v2 }
 0x1e4   : > { %1032 = verf.f32 %v508_v3 }
 0x1e5   : > { %1034 = verf.f32 %v509_v4 }
 0x1ea   : > { %v1029_v6 = vpop.eup %1028 }
 0x1eb   : > { %v1031_v8 = vpop.eup %1030  ;;  %v514_v9 = vadd.f32 1.0, %v1029_v6 }
 0x1ec   : > { %v515_v10 = vadd.f32 1.0, %v1031_v8 }
 0x1ed   : > { %v518_v11 = vmul.f32 %v514_v9, %v502_v5 }
 0x1ee   : > { %v1033_v12 = vpop.eup %1032  ;;  %v519_v13 = vmul.f32 %v515_v10, %v503_v7 }
 0x1ef   : > { %v1035_v14 = vpop.eup %1034  ;;  %v516_v16 = vadd.f32 1.0, %v1033_v12  ;;  %832 = vst [vmem:[%s1360_s21] sm:$0xff] %v518_v11 }
 0x1f0   : > { %v517_v18 = vadd.f32 1.0, %v1035_v14  ;;  %833 = vst [vmem:[%s1360_s21 + $0x8] sm:$0xff] %v519_v13 }
 0x1f1   : > { %v520_v21 = vmul.f32 %v516_v16, %v504_v15 }
 0x1f2   : > { %v521_v22 = vmul.f32 %v517_v18, %v505_v17 }
 0x1f3   : > { %834 = vst [vmem:[%s1360_s21 + $0x10] sm:$0xff] %v520_v21 }
 0x1f4   : > { %835 = vst [vmem:[%s1360_s21 + $0x18] sm:$0xff] %v521_v22 }
 0x26e   : > { %v801_v25 = vpop.f32.mrb[2].mxu0  ;;  %v807_v26 = vpop.f32.mrb[4].mxu1 }
 0x26f   : > { %v802_v27 = vadd.f32 %v801_v25, %v721_v24  ;;  %v808_v28 = vadd.f32 %v807_v26, %v726_v23  ;;  %v803_v29 = vpop.f32.mrb[3].mxu0  ;;  %v809_v31 = vpop.f32.mrb[5].mxu1 }
 0x270   : > { %v804_v32 = vadd.f32 %v803_v29, %v721_v24  ;;  %v810_v33 = vadd.f32 %v809_v31, %v726_v23 }
 0x271   : > { %v816_v34 = vmul.f32 0.70710677, %v802_v27  ;;  %v818_v20 = vmul.f32 0.70710677, %v808_v28  ;;  %v812_v41 = vmul.f32 0.5, %v802_v27  ;;  %v814_v19 = vmul.f32 0.5, %v808_v28 }
 0x272   : > { %v817_v37 = vmul.f32 0.70710677, %v804_v32  ;;  %v819_v38 = vmul.f32 0.70710677, %v810_v33  ;;  %v813_v47 = vmul.f32 0.5, %v804_v32  ;;  %v815_v50 = vmul.f32 0.5, %v810_v33 }
 0x273   : > { %1036 = verf.f32 %v816_v34 }
 0x274   : > { %1038 = verf.f32 %v818_v20 }
 0x275   : > { %1040 = verf.f32 %v817_v37 }
 0x276   : > { %1042 = verf.f32 %v819_v38 }
 0x27d   : > { %v1037_v39 = vpop.eup %1036 }
 0x27e   : > { %v1039_v40 = vpop.eup %1038  ;;  %v824_v42 = vadd.f32 1.0, %v1037_v39 }
 0x27f   : > { %v1041_v43 = vpop.eup %1040  ;;  %v826_v44 = vadd.f32 1.0, %v1039_v40 }
 0x280   : > { %v1043_v45 = vpop.eup %1042  ;;  %v828_v46 = vmul.f32 %v824_v42, %v812_v41  ;;  %v825_v48 = vadd.f32 1.0, %v1041_v43 }
 0x281   : > { %v830_v49 = vmul.f32 %v826_v44, %v814_v19  ;;  %v827_v51 = vadd.f32 1.0, %v1043_v45 }
 0x282   : > { %836 = vst [vmem:[%s1360_s21 + $0x20] sm:$0xff] %v828_v46  ;;  %v829_v52 = vmul.f32 %v825_v48, %v813_v47 }
 0x283   : > { %838 = vst [vmem:[%s1360_s21 + $0x30] sm:$0xff] %v830_v49  ;;  %v831_v53 = vmul.f32 %v827_v51, %v815_v50 }
 0x284   : > { %837 = vst [vmem:[%s1360_s21 + $0x28] sm:$0xff] %v829_v52 }
 0x285   : > { %839 = vst [vmem:[%s1360_s21 + $0x38] sm:$0xff] %v831_v53 }
 0x286   : > { %1057 = shalt.err (!%p1054_p3)
}
 0x287   : > { %s1058_s19 = scalar_lea.hbm %s1372_s10, 1024  ;;  %s1062_s22 = scalar_lea.hbm %s1431_s8, 2048 }
 0x288   : > { %p1059_p4 = scmp.ne.s32.totalorder %s1372_s10, %s1058_s19  ;;  %p1063_p9 = scmp.lt.u32.totalorder %s1372_s10, %s1431_s8 }
 0x289   : > { %p1064_p10 = scmp.lt.u32.totalorder %s1062_s22, %s1058_s19  ;;  %p1066_p12 = scmp.lt.u32.totalorder %s1058_s19, %s1372_s10 }
 0x28a   : > { %p1060_p7 = pnand %p1059_p4, %p1203_p5 }
 0x28b   : > { %p1065_p11 = por %p1064_p10, %p1063_p9 }
 0x28c   : > { %p1061_p8 = pneg %p1060_p7 }
 0x28d   : > { %p1067_p13 = por %p1066_p12, %p1065_p11 }
 0x28f   : > { %p1068_p0 = pnand %p1067_p13, %p1061_p8 }
 0x291   : > { %1071 = shalt.err (!%p1068_p0)
}
 0x292   : > { %s1119_s12 = smov 256  }
 0x293   : > { %971 = dma.vmem_to_hbm [thread:$0]  (%p1203_p5), %s1375_s23, 1024, %s1372_s10, %s1381_s9, %s1119_s12, %s1119_s12, %s1110_s26  }
 0x294 PF: > { %p977_p1 = scmp.ge.s32.totalorder %s1106_s30, 2  ;;  %s869_s13 = sand.u32 1, %s1094_s27  }
 0x295   : > { %s870_s17 = scalar_lea.sflag [#allocation3], %s869_s13 }
 0x296   : > { %p974_p2 = pnand %p977_p1, %p1207_p6 }
 0x298   : > { %1089 = dma.done.wait (!%p974_p2), %s870_s17, 1024  }
 0x299   : > { %1091 = vsyncadd (!%p974_p2), %s870_s17, 4294966272  ;;  %p18_p3 = scmp.ge.s32.totalorder %s1190_s11, 4   ;;  %s1434_s27 = smov %s1098_s28 }
 0x29a   : > { %s1435_s28 = smov %s1102_s29  ;;  %s1436_s29 = smov %s1201_s14 }
 0x29b   : > { %s1437_s30 = smov %s1190_s11  ;;  %20 = sbr.rel (!%p18_p3) target bundleno = 3 (0x3), region = 95 }
 0x2a2   :  { %875 = vsyncpa [#allocation3], 1 }
 0x2a3   :  { %877 = vsyncpa [#allocation3 + $0x1], 1 }

</bundles_post_ra>
